<compile_context>
chip_gen: v7x
topology: tpu7x:2x2x1
jax: 0.10.0
libtpu: 0.0.40
codegen_flags: <defaults>
</compile_context>

<pallas_src>
import functools

import jax
import jax.numpy as jnp
from jax import lax
from jax.experimental import pallas as pl
from jax.experimental.pallas import tpu as pltpu

EPS = 1e-5
LANES = 128              # channel padding granularity (MXU lane width)
SUBLANES = 8             # sublane alignment for row offsets / tile sizes
DEFAULT_TILE_ROWS = 512  # flattened output rows per grid step (mult of 8)


def _round_up(x, m):
    return ((x + m - 1) // m) * m


def _cdiv(a, b):
    return -(-a // b)


# ------------------------------- Pallas kernel --------------------------------

def _conv_bn_kernel(*refs, ksize, stride, ws_pad, tm, relu, has_residual):
    """One (image, row-tile) grid step of a direct conv + eval-BN epilogue.

    refs:
      x_ref : (1, ss, TW, Cin_p)  bf16 parity-split, row-flattened chunk.
                                  Tap (kh, kw) of output row m is chunk row
                                  m + (kh//stride)*ws_pad + (kw//stride) of
                                  parity plane (kh % stride)*stride + (kw % stride).
      w_ref : (ksize*ksize, Cin_p, Cout_p) bf16 conv weights (unscaled).
      s_ref : (1, Cout_p) f32 folded-BN scale   (gamma / sqrt(var + eps)).
      b_ref : (1, Cout_p) f32 folded-BN bias    (beta - mean * scale).
      r_ref : (1, TM, Cout_p) optional residual (only if has_residual).
      o_ref : (1, TM, Cout_p) output tile.
    """
    if has_residual:
        x_ref, w_ref, s_ref, b_ref, r_ref, o_ref = refs
    else:
        x_ref, w_ref, s_ref, b_ref, o_ref = refs
        r_ref = None

    cout = o_ref.shape[-1]
    acc = jnp.zeros((tm, cout), jnp.float32)
    for kh in range(ksize):                          # static 9-tap (or 1-tap) unroll
        for kw in range(ksize):
            pidx = (kh % stride) * stride + (kw % stride)
            # static offset; 8-aligned whenever kw // stride == 0
            off = (kh // stride) * ws_pad + (kw // stride)
            tap = x_ref[0, pidx, pl.ds(off, tm), :]              # (TM, Cin) bf16
            acc = acc + jnp.dot(tap, w_ref[kh * ksize + kw, :, :],
                                preferred_element_type=jnp.float32)

    # eval-mode BatchNorm applied in f32 (not folded into bf16 weights)
    acc = acc * s_ref[...] + b_ref[...]
    if has_residual:
        acc = acc + r_ref[0, :, :].astype(jnp.float32)
    if relu:
        acc = jnp.maximum(acc, 0.0)
    o_ref[0, :, :] = acc.astype(o_ref.dtype)


# ------------------------------- Wrapper ---------------------------------------

def conv_bn_act(x, w, scale, bias, *, stride, ksize, pad,
                residual=None, relu=True, out_dtype=jnp.bfloat16,
                tile_rows=DEFAULT_TILE_ROWS):
    """Fused conv2d (bias-free) + eval-mode BN + optional residual + ReLU.

    x        : (N, H, W, Cin_p) NHWC, channels zero-padded to LANES (bf16 ok).
    w        : (ksize, ksize, Cin, Cout) HWIO weights (un-padded, f32).
    residual : optional (N, Ho, Wo, Cout_p).
    returns  : (N, Ho, Wo, Cout_p), Cout_p = round_up(Cout, LANES), out_dtype.
    """
    N, H, W, cin_p = x.shape
    cin, cout = w.shape[2], w.shape[3]
    cout_p = _round_up(cout, LANES)
    assert cin_p % LANES == 0 and cin <= cin_p
    x = x.astype(jnp.bfloat16)

    # Channel-padded bf16 weights; BN scale/bias stay f32 for the epilogue.
    wf = jnp.pad(w, ((0, 0), (0, 0), (0, cin_p - cin), (0, cout_p - cout)))
    wf = wf.reshape(ksize * ksize, cin_p, cout_p).astype(jnp.bfloat16)
    scale_p = jnp.pad(scale, (0, cout_p - cout)).reshape(1, cout_p).astype(jnp.float32)
    bias_p = jnp.pad(bias, (0, cout_p - cout)).reshape(1, cout_p).astype(jnp.float32)

    Ho = (H + 2 * pad - ksize) // stride + 1
    Wo = (W + 2 * pad - ksize) // stride + 1

    if ksize == 1:
        assert pad == 0
        eff_stride, ss, a = 1, 1, 0
        xin = x[:, ::stride, ::stride, :]          # (N, Ho, Wo, Cin_p)
        Hin, Win, in_pad = Ho, Wo, 0
    else:
        eff_stride, ss = stride, stride * stride
        a = (ksize - 1) // stride                  # extra rows/cols per plane
        xin, Hin, Win, in_pad = x, H, W, pad

    ws_pad = _round_up(Wo + a, SUBLANES)           # padded plane width (8-aligned)
    m_full = Ho * ws_pad                           # flattened output rows (+ overhang cols)
    tm = min(_round_up(tile_rows, SUBLANES), m_full)
    n_t = _cdiv(m_full, tm)
    m_pad = n_t * tm
    halo = _round_up(a * ws_pad + a, SUBLANES) if a > 0 else 0
    tw = tm + halo                                 # chunk rows = tile + 3x3 halo
    f_needed = (n_t - 1) * tm + tw                 # plane rows the chunks touch
    hs_c = _cdiv(f_needed, ws_pad)                 # padded image rows per plane
    f_total = hs_c * ws_pad

    # Flattened (parity-split) planes: ONE pad, and for stride 2 a single
    # reshape+transpose (no strided-slice gathers + stack).
    if ksize == 1:
        xp = jnp.pad(xin, ((0, 0), (0, hs_c - Hin), (0, ws_pad - Win), (0, 0)))
        xf = xp.reshape(N, 1, f_total, cin_p)
    elif eff_stride == 1:
        xp = jnp.pad(xin, ((0, 0), (in_pad, hs_c - Hin - in_pad),
                           (in_pad, ws_pad - Win - in_pad), (0, 0)))
        xf = xp.reshape(N, 1, f_total, cin_p)
    else:
        s = eff_stride
        xp = jnp.pad(xin, ((0, 0), (in_pad, s * hs_c - Hin - in_pad),
                           (in_pad, s * ws_pad - Win - in_pad), (0, 0)))
        xf = xp.reshape(N, hs_c, s, ws_pad, s, cin_p)
        xf = xf.transpose(0, 2, 4, 1, 3, 5).reshape(N, ss, f_total, cin_p)

    # Overlapping row-tile chunks: chunk t covers flattened plane rows
    # [t*tm, t*tm + tw).  Halo duplication is halo/tm of the activation.
    if tw == tm and f_total == m_pad:
        xc = xf.reshape(N * n_t, ss, tw, cin_p)    # no halo -> pure reshape
    else:
        xc = jnp.stack([xf[:, :, t * tm: t * tm + tw, :] for t in range(n_t)],
                       axis=1)
        xc = xc.reshape(N * n_t, ss, tw, cin_p)

    args = [xc, wf, scale_p, bias_p]
    in_specs = [
        pl.BlockSpec((1, ss, tw, cin_p), lambda n, t: (n * n_t + t, 0, 0, 0)),
        # weights / scale / bias: constant index maps -> stay resident in VMEM
        pl.BlockSpec((ksize * ksize, cin_p, cout_p), lambda n, t: (0, 0, 0)),
        pl.BlockSpec((1, cout_p), lambda n, t: (0, 0)),
        pl.BlockSpec((1, cout_p), lambda n, t: (0, 0)),
    ]
    if residual is not None:
        r = jnp.pad(residual.astype(jnp.bfloat16),
                    ((0, 0), (0, 0), (0, ws_pad - Wo), (0, 0)))
        r = r.reshape(N, m_full, cout_p)
        r = jnp.pad(r, ((0, 0), (0, m_pad - m_full), (0, 0)))
        args.append(r)
        in_specs.append(pl.BlockSpec((1, tm, cout_p), lambda n, t: (n, t, 0)))

    kernel = functools.partial(
        _conv_bn_kernel, ksize=ksize, stride=eff_stride, ws_pad=ws_pad,
        tm=tm, relu=relu, has_residual=residual is not None)

    out_itemsize = jnp.dtype(out_dtype).itemsize
    flops = 2 * N * m_pad * (ksize * ksize * cin_p) * cout_p
    bytes_accessed = (sum(int(a.size) * a.dtype.itemsize for a in args)
                      + N * m_pad * cout_p * out_itemsize)

    out = pl.pallas_call(
        kernel,
        out_shape=jax.ShapeDtypeStruct((N, m_pad, cout_p), out_dtype),
        grid_spec=pltpu.PrefetchScalarGridSpec(
            num_scalar_prefetch=0,
            grid=(N, n_t),
            in_specs=in_specs,
            out_specs=pl.BlockSpec((1, tm, cout_p), lambda n, t: (n, t, 0)),
        ),
        compiler_params=pltpu.CompilerParams(
            dimension_semantics=("parallel", "parallel"),
            vmem_limit_bytes=32 * 1024 * 1024),
        cost_estimate=pl.CostEstimate(
            flops=int(flops), transcendentals=0,
            bytes_accessed=int(bytes_accessed)),
    )(*args)

    # Strip the row-tile padding and lane-overhang columns.
    out = out[:, :m_full, :].reshape(N, Ho, ws_pad, cout_p)[:, :, :Wo, :]
    return out


# ------------------------------- Parameters ------------------------------------

def _init_conv(key, kh, kw, cin, cout):
    return 0.1 * jax.random.normal(key, (kh, kw, cin, cout), jnp.float32)


def _init_bn(key, c):
    k1, k2, k3, k4 = jax.random.split(key, 4)
    gamma = 1.0 + 0.1 * jax.random.normal(k1, (c,), jnp.float32)
    beta = 0.1 * jax.random.normal(k2, (c,), jnp.float32)
    mean = 0.1 * jax.random.normal(k3, (c,), jnp.float32)
    var = 1.0 + 0.1 * jax.random.uniform(k4, (c,), jnp.float32)
    return {"gamma": gamma, "beta": beta, "mean": mean, "var": var}


def _fold_bn(bn):
    scale = bn["gamma"] / jnp.sqrt(bn["var"] + EPS)
    bias = bn["beta"] - bn["mean"] * scale
    return scale, bias


def init_bottleneck(key, inplanes, planes, stride, downsample):
    ks = jax.random.split(key, 6)
    p = {
        "conv1": _init_conv(ks[0], 3, 3, inplanes, planes),
        "bn1": _init_bn(ks[1], planes),
        "conv2": _init_conv(ks[2], 3, 3, planes, planes),
        "bn2": _init_bn(ks[3], planes),
        "stride": stride,
    }
    if downsample:
        p["conv_d"] = _init_conv(ks[4], 1, 1, inplanes, planes)
        p["bn_d"] = _init_bn(ks[5], planes)
    return p


def init_make_layer(key, inplanes, planes, first=False):
    k0, k1 = jax.random.split(key)
    if first:
        assert inplanes == planes
        block0 = init_bottleneck(k0, inplanes, planes, stride=1, downsample=False)
    else:
        block0 = init_bottleneck(k0, inplanes, planes, stride=2, downsample=True)
    block1 = init_bottleneck(k1, planes, planes, stride=1, downsample=False)
    return {"block0": block0, "block1": block1}


# ------------------------------- Forward passes ---------------------------------

def bottleneck_forward(params, x, *, tile_rows=DEFAULT_TILE_ROWS):
    """x: (N, H, W, Cin_p) NHWC bf16 with lane-padded channels (padding zero)."""
    s1, b1 = _fold_bn(params["bn1"])
    s2, b2 = _fold_bn(params["bn2"])
    stride = params["stride"]

    if "conv_d" in params:
        sd, bd = _fold_bn(params["bn_d"])
        residual = conv_bn_act(x, params["conv_d"], sd, bd,
                               stride=stride, ksize=1, pad=0,
                               relu=False, tile_rows=tile_rows)
    else:
        residual = x    # identity shortcut; channels already lane-padded

    out = conv_bn_act(x, params["conv1"], s1, b1,
                      stride=stride, ksize=3, pad=1,
                      relu=True, tile_rows=tile_rows)
    out = conv_bn_act(out, params["conv2"], s2, b2,
                      stride=1, ksize=3, pad=1,
                      residual=residual, relu=True, tile_rows=tile_rows)
    return out


def make_layer_forward(params, x_nchw, *, tile_rows=DEFAULT_TILE_ROWS):
    x = jnp.transpose(x_nchw, (0, 2, 3, 1))                  # NCHW -> NHWC
    cin = x.shape[-1]
    x = jnp.pad(x, ((0, 0), (0, 0), (0, 0), (0, _round_up(cin, LANES) - cin)))
    x = x.astype(jnp.bfloat16)                               # cast once, up front
    y = bottleneck_forward(params["block0"], x, tile_rows=tile_rows)
    y = bottleneck_forward(params["block1"], y, tile_rows=tile_rows)
    planes = params["block1"]["conv1"].shape[-1]
    y = y[..., :planes].astype(jnp.float32)
    return jnp.transpose(y, (0, 3, 1, 2))                    # NHWC -> NCHW


# ------------------------------- Pure-JAX reference ------------------------------

def _ref_conv(x, w, stride, pad):
    return lax.conv_general_dilated(
        x, w, (stride, stride), [(pad, pad), (pad, pad)],
        dimension_numbers=("NHWC", "HWIO", "NHWC"))


def _ref_bottleneck(params, x):
    s1, b1 = _fold_bn(params["bn1"])
    s2, b2 = _fold_bn(params["bn2"])
    stride = params["stride"]
    if "conv_d" in params:
        sd, bd = _fold_bn(params["bn_d"])
        residual = _ref_conv(x, params["conv_d"], stride, 0) * sd + bd
    else:
        residual = x
    out = jnp.maximum(_ref_conv(x, params["conv1"], stride, 1) * s1 + b1, 0.0)
    out = _ref_conv(out, params["conv2"], 1, 1) * s2 + b2
    return jnp.maximum(out + residual, 0.0)


def _ref_make_layer(params, x_nchw):
    x = jnp.transpose(x_nchw, (0, 2, 3, 1))
    y = _ref_bottleneck(params["block0"], x)
    y = _ref_bottleneck(params["block1"], y)
    return jnp.transpose(y, (0, 3, 1, 2))


# ------------------------------- Main --------------------------------------------

if __name__ == "__main__":
    key = jax.random.PRNGKey(0)
    kx, kp = jax.random.split(key)

    inplanes, planes = 4, 8
    x = jax.random.normal(kx, (2, inplanes, 16, 16), jnp.float32)   # NCHW input

    params = init_make_layer(kp, inplanes, planes, first=False)

    y_ref = jax.block_until_ready(_ref_make_layer(params, x))

    # Default tiling (one row tile per image at this tiny size).
    y = jax.block_until_ready(make_layer_forward(params, x))
    assert y.shape == (2, planes, 8, 8), y.shape
    # bf16 matmul operands / activations vs. f32 reference; BN scale/bias are
    # applied in f32 in the kernel epilogue, so tolerance is moderate.
    assert jnp.allclose(y, y_ref, atol=3e-2, rtol=3e-2), \
        float(jnp.max(jnp.abs(y - y_ref)))

    # Small tile_rows to exercise the multi-tile, pipelined grid path.
    y2 = jax.block_until_ready(make_layer_forward(params, x, tile_rows=32))
    assert jnp.allclose(y2, y_ref, atol=3e-2, rtol=3e-2), \
        float(jnp.max(jnp.abs(y2 - y_ref)))

    print("KERNEL_OK")
</pallas_src>

<mosaic_0001>
module attributes {stable_mosaic.version = 11 : i64} {
  func.func @_conv_bn_kernel(%arg0: i32, %arg1: i32, %arg2: memref<1x1x64x128xbf16, #tpu.memory_space<vmem>>, %arg3: memref<1x128x128xbf16, #tpu.memory_space<vmem>>, %arg4: memref<1x128xf32, #tpu.memory_space<vmem>>, %arg5: memref<1x128xf32, #tpu.memory_space<vmem>>, %arg6: memref<1x64x128xbf16, #tpu.memory_space<vmem>>) attributes {dimension_semantics = [#tpu.dimension_semantics<parallel>, #tpu.dimension_semantics<parallel>], iteration_bounds = array<i64: 2, 1>, scalar_prefetch = 0 : i64, scratch_operands = 0 : i64, tpu.core_type = #tpu.core_type<tc>, window_params = [{transform_indices = @transform_0, window_bounds = array<i64: 1, 1, 64, 128>}, {pipeline_mode = #tpu.pipeline_mode<synchronous>, transform_indices = @transform_1, window_bounds = array<i64: 1, 128, 128>}, {pipeline_mode = #tpu.pipeline_mode<synchronous>, transform_indices = @transform_2, window_bounds = array<i64: 1, 128>}, {pipeline_mode = #tpu.pipeline_mode<synchronous>, transform_indices = @transform_3, window_bounds = array<i64: 1, 128>}, {transform_indices = @transform_4, window_bounds = array<i64: 1, 64, 128>}]} {
    %cst = arith.constant 0.000000e+00 : f32
    %0 = vector.broadcast %cst : f32 to vector<64x128xf32>
    %c0 = arith.constant 0 : index
    %c0_0 = arith.constant 0 : index
    %c0_1 = arith.constant 0 : index
    %c0_2 = arith.constant 0 : index
    %1 = vector.load %arg2[%c0, %c0_0, %c0_1, %c0_2] : memref<1x1x64x128xbf16, #tpu.memory_space<vmem>>, vector<1x1x64x128xbf16>
    %2 = vector.shape_cast %1 : vector<1x1x64x128xbf16> to vector<64x128xbf16>
    %c0_3 = arith.constant 0 : index
    %c0_4 = arith.constant 0 : index
    %c0_5 = arith.constant 0 : index
    %3 = vector.load %arg3[%c0_3, %c0_4, %c0_5] : memref<1x128x128xbf16, #tpu.memory_space<vmem>>, vector<1x128x128xbf16>
    %4 = vector.shape_cast %3 : vector<1x128x128xbf16> to vector<128x128xbf16>
    %cst_6 = arith.constant dense<0.000000e+00> : vector<64x128xf32>
    %5 = tpu.matmul %2, %4, %cst_6 {dimension_numbers = #tpu.dot_dimension_numbers<[1], [0], [0], [1], [0, 0, 1, 1], [], []>} : vector<64x128xbf16>, vector<128x128xbf16>, vector<64x128xf32> -> vector<64x128xf32>
    %6 = arith.addf %0, %5 : vector<64x128xf32>
    %c0_7 = arith.constant 0 : index
    %c0_8 = arith.constant 0 : index
    %7 = vector.load %arg4[%c0_7, %c0_8] : memref<1x128xf32, #tpu.memory_space<vmem>>, vector<1x128xf32>
    %8 = vector.broadcast %7 : vector<1x128xf32> to vector<64x128xf32>
    %9 = arith.mulf %6, %8 : vector<64x128xf32>
    %c0_9 = arith.constant 0 : index
    %c0_10 = arith.constant 0 : index
    %10 = vector.load %arg5[%c0_9, %c0_10] : memref<1x128xf32, #tpu.memory_space<vmem>>, vector<1x128xf32>
    %11 = vector.broadcast %10 : vector<1x128xf32> to vector<64x128xf32>
    %12 = arith.addf %9, %11 : vector<64x128xf32>
    %13 = arith.truncf %12 : vector<64x128xf32> to vector<64x128xbf16>
    %c0_11 = arith.constant 0 : index
    %c0_12 = arith.constant 0 : index
    %c0_13 = arith.constant 0 : index
    %14 = vector.load %arg6[%c0_11, %c0_12, %c0_13] : memref<1x64x128xbf16, #tpu.memory_space<vmem>>, vector<1x64x128xbf16>
    %15 = vector.shape_cast %14 : vector<1x64x128xbf16> to vector<64x128xbf16>
    %16 = vector.shape_cast %13 : vector<64x128xbf16> to vector<1x64x128xbf16>
    tpu.vector_store %arg6[%c0_11, %c0_12, %c0_13], %16 {strides = array<i32>} : memref<1x64x128xbf16, #tpu.memory_space<vmem>>, vector<1x64x128xbf16>,
    return
  }
  func.func @transform_0(%arg0: i32, %arg1: i32) -> (i32, i32, i32, i32) {
    %c1_i32 = arith.constant 1 : i32
    %0 = arith.muli %arg0, %c1_i32 : i32
    %1 = arith.addi %0, %arg1 : i32
    %c0_i32 = arith.constant 0 : i32
    %c0_i32_0 = arith.constant 0 : i32
    %c0_i32_1 = arith.constant 0 : i32
    %c0_i32_2 = arith.constant 0 : i32
    return %1, %c0_i32, %c0_i32_0, %c0_i32_1 : i32, i32, i32, i32
  }
  func.func @transform_1(%arg0: i32, %arg1: i32) -> (i32, i32, i32) {
    %c0_i32 = arith.constant 0 : i32
    %c0_i32_0 = arith.constant 0 : i32
    %c0_i32_1 = arith.constant 0 : i32
    %c0_i32_2 = arith.constant 0 : i32
    return %c0_i32, %c0_i32_0, %c0_i32_1 : i32, i32, i32
  }
  func.func @transform_2(%arg0: i32, %arg1: i32) -> (i32, i32) {
    %c0_i32 = arith.constant 0 : i32
    %c0_i32_0 = arith.constant 0 : i32
    %c0_i32_1 = arith.constant 0 : i32
    return %c0_i32, %c0_i32_0 : i32, i32
  }
  func.func @transform_3(%arg0: i32, %arg1: i32) -> (i32, i32) {
    %c0_i32 = arith.constant 0 : i32
    %c0_i32_0 = arith.constant 0 : i32
    %c0_i32_1 = arith.constant 0 : i32
    return %c0_i32, %c0_i32_0 : i32, i32
  }
  func.func @transform_4(%arg0: i32, %arg1: i32) -> (i32, i32, i32) {
    %c0_i32 = arith.constant 0 : i32
    %c0_i32_0 = arith.constant 0 : i32
    return %arg0, %arg1, %c0_i32 : i32, i32, i32
  }
}

</mosaic_0001>

<bundles_post_ra>
// kernel: tpu_custom_call.1
= control target key start
LH: loop header
LB: loop body
LE: loop exit
PB: predicated region body
PF: predicated region fallthrough
CT: control target
= control target key end

     0   :  { %9 = vsyncpa [#allocation3], 0  ;;  %s1225_s0 = inlined_call_operand.hbm [shape: bf16[2,1,64,128], index: 0, kind: input, shape index: {}]   ;;  %s1226_s1 = inlined_call_operand.hbm [shape: bf16[1,128,128], index: 1, kind: input, shape index: {}]   ;;  %s1227_s2 = inlined_call_operand.vmem [shape: f32[1,128], index: 2, kind: input, shape index: {}]   ;;  %s1228_s3 = inlined_call_operand.vmem [shape: f32[1,128], index: 3, kind: input, shape index: {}]   ;;  %s1229_s4 = inlined_call_operand.hbm [shape: bf16[2,64,128], index: 4, kind: output, shape index: {}]  }
   0x1   :  { %11 = vsyncpa [#allocation3 + $0x1], 0 }
   0x2   :  { %12 = vsyncpa [#allocation6], 0 }
   0x3   :  { %13 = vsyncpa [#allocation4], 0 }
   0x4   :  { %15 = vsyncpa [#allocation4 + $0x1], 0  ;;  %s984_s15 = smov 0   ;;  %s986_s16 = smov 0  }
   0x5   :  { %s988_s17 = smov 0   ;;  %s990_s18 = smov 0  }
   0x6   :  { %s992_s19 = smov 0   ;;  %s994_s20 = smov 0  }
   0x7 LB: > { %s593_s21 = sadd.s32 4294967295, %s950_s20   ;;  %s594_s22 = sadd.s32 4294967294, %s950_s20   ;;  %s950_s20 = sphi %s994_s20, %s21_s20   ;;  %s946_s19 = sphi %s992_s19, %s1253_s19   ;;  %s942_s18 = sphi %s990_s18, %s1252_s18   ;;  %s938_s17 = sphi %s988_s17, %s1251_s17   ;;  %s934_s16 = sphi %s986_s16, %s1250_s16   ;;  %s930_s15 = sphi %s984_s15, %s1249_s15  }
   0x8   : > { %p55_p0 = scmp.ne.s32.totalorder %s934_s16, %s930_s15  ;;  %p1018_p1 = scmp.eq.s32.totalorder %s593_s21, 0 }
   0x9   : > { %p1022_p2 = scmp.eq.s32.totalorder %s593_s21, 1  ;;  %p150_p3 = scmp.eq.s32.totalorder %s594_s22, 1 }
   0xa   : > { %s1234_s23 = scalar_select %p1018_p1, 1, 0 }
   0xb   : > { %s1235_s24 = scalar_select %p1022_p2, 1, 0 }
   0xc   : > { %p1028_p4 = por %p1018_p1, %p55_p0  ;;  %p595_p5 = scmp.ge.s32.totalorder %s950_s20, 1 }
   0xd   : > { %p1033_p6 = por %p150_p3, %p55_p0  ;;  %p157_p7 = scmp.lt.s32.totalorder %s950_s20, 3 }
   0xe   : > { %s1236_s25 = scalar_select %p1028_p4, 1, 0 }
   0xf   : > { %s1237_s26 = scalar_select %p1033_p6, 1, 0 }
  0x10   : > { %p1038_p8 = pnand %p595_p5, %p157_p7  ;;  %s952_s28 = smov [#allocation5]  }
  0x11   : > { %s169_s29 = sshll.u32 %s952_s28, 4  ;;  %s33_s5 = sadd.s32 1, %s946_s19  ;;  %s170_s29 = int_to_ptr.vmem [resolvable:$true] %s169_s29 }
  0x12   : > { %s1238_s27 = scalar_select %p1038_p8, 1, 0 }
  0x13   : > { %p725_p9 = pneg %p1038_p8  ;;  %s806_s8 = scalar_lea.hbm %s1226_s1, 1024 }
  0x14   : > { %p807_p12 = scmp.ne.s32.totalorder %s1226_s1, %s806_s8  ;;  %p813_p5 = scmp.lt.u32.totalorder %s806_s8, %s1226_s1 }
  0x15   : > { %p1047_p11 = pnand %p725_p9, %p1018_p1 }
  0x17   : > { %p808_p13 = pneg %p1047_p11 }
  0x19   : > { %p809_p0 = pnand %p808_p13, %p807_p12 }
  0x1b   : > { %p810_p3 = pneg %p809_p0 }
  0x1d   : > { %p815_p7 = pnand %p813_p5, %p810_p3 }
  0x1f   : > { %818 = shalt.err (!%p815_p7)
}
  0x20   : > { %s819_s13 = scalar_lea.vmem %s170_s29, 1024  ;;  %p827_p1 = scmp.lt.s32.totalorder %s170_s29, %s170_s29 }
  0x21   : > { %p820_p9 = scmp.ne.s32.totalorder %s170_s29, %s819_s13  ;;  %p828_p4 = scmp.lt.s32.totalorder %s819_s13, %s819_s13 }
  0x23   : > { %p822_p10 = pnand %p820_p9, %p808_p13  ;;  %p829_p8 = por %p828_p4, %p827_p1 }
  0x25   : > { %p823_p6 = pneg %p822_p10 }
  0x27   : > { %p830_p2 = pnand %p829_p8, %p823_p6 }
  0x29   : > { %833 = shalt.err (!%p830_p2)
}
  0x2a   : > { %s953_s14 = smov 64   ;;  %s954_s21 = smov 4  }
  0x2b   : > { %728 = dma.hbm_to_vmem [thread:$0]  (!%p1047_p11), %s1226_s1, 1024, %s170_s29, [#allocation6], %s953_s14, %s953_s14, %s954_s21  }
  0x2c   : > { %p35_p1 = scmp.ge.s32.totalorder %s33_s5, 2  ;;  %s42_s6 = sadd.s32 1, %s938_s17 }
  0x2d   : > { %p49_p2 = scmp.ne.s32.totalorder %s938_s17, %s934_s16  ;;  %p50_p4 = scmp.eq.s32.totalorder %s950_s20, 0 }
  0x2e   : > { %s1255_s5 = smov (%p35_p1, %s33_s5), 0  ;;  %p1241_p8 = scmp.ne.s32.totalorder %s1235_s24, 0 }
  0x2f   : > { %p1077_p6 = por %p50_p4, %p49_p2  ;;  %s39_s8 = ssub.s32 %s946_s19, %s1255_s5 }
  0x30   : > { %p1083_p10 = por %p1241_p8, %p49_p2  ;;  %p738_p12 = scmp.lt.s32.totalorder %s950_s20, 2 }
  0x31   : > { %p40_p11 = scmp.eq.s32.totalorder %s39_s8, 0  ;;  %s189_s29 = sand.u32 1, %s938_s17  }
  0x32   : > { %s598_s9 = sshll.u32 %s189_s29, 5  ;;  %s632_s11 = sshll.u32 %s946_s19, 9 }
  0x33   : > { %s1092_s10 = scalar_select %p40_p11, %s938_s17, %s42_s6  }
  0x34   : > { %s1098_s22 = scalar_lea.hbm %s1225_s0, %s632_s11  ;;  %s193_s24 = scalar_lea.vmem [#allocation2], %s598_s9 }
  0x35   : > { %s201_s28 = sshll.u32 %s193_s24, 4  ;;  %p1104_p13 = pnand %p738_p12, %p1077_p6  ;;  %s1100_s28 = int_to_ptr.vmem [resolvable:$true] %s201_s28 }
  0x36   : > { %s1108_s6 = scalar_lea.sflag [#allocation3], %s189_s29  ;;  %s834_s12 = scalar_lea.hbm %s1098_s22, 512 }
  0x37   : > { %p835_p0 = scmp.ne.s32.totalorder %s1098_s22, %s834_s12  ;;  %p836_p3 = pneg %p1104_p13 }
  0x38   : > { %s839_s7 = scalar_lea.hbm %s1225_s0, 1024  ;;  %p840_p9 = scmp.lt.u32.totalorder %s1098_s22, %s1225_s0 }
  0x39   : > { %p837_p5 = pnand %p836_p3, %p835_p0  ;;  %p841_p1 = scmp.lt.u32.totalorder %s839_s7, %s834_s12 }
  0x3a   : > { %p843_p4 = scmp.lt.u32.totalorder %s834_s12, %s1098_s22 }
  0x3b   : > { %p838_p7 = pneg %p837_p5  ;;  %p842_p2 = por %p841_p1, %p840_p9 }
  0x3d   : > { %p844_p6 = por %p843_p4, %p842_p2 }
  0x3f   : > { %p845_p8 = pnand %p844_p6, %p838_p7 }
  0x41   : > { %848 = shalt.err (!%p845_p8)
}
  0x42   : > { %s849_s29 = scalar_lea.vmem %s1100_s28, 512  ;;  %s955_s9 = smov [#allocation2]  }
  0x43   : > { %p850_p12 = scmp.ne.s32.totalorder %s1100_s28, %s849_s29  ;;  %s854_s11 = sshll.u32 %s955_s9, 4  ;;  %s855_s11 = int_to_ptr.vmem [resolvable:$false] %s854_s11 }
  0x44   : > { %s856_s13 = scalar_lea.vmem %s855_s11, 1024  ;;  %p857_p5 = scmp.lt.s32.totalorder %s1100_s28, %s855_s11 }
  0x45   : > { %p852_p11 = pnand %p850_p12, %p836_p3  ;;  %p858_p9 = scmp.lt.s32.totalorder %s856_s13, %s849_s29 }
  0x47   : > { %p853_p0 = pneg %p852_p11  ;;  %p859_p1 = por %p858_p9, %p857_p5 }
  0x49   : > { %p860_p2 = pnand %p859_p1, %p853_p0 }
  0x4b   : > { %863 = shalt.err (!%p860_p2)
}
  0x4c   : > { %732 = dma.hbm_to_vmem [thread:$0]  (!%p1104_p13), %s1098_s22, 512, %s1100_s28, %s1108_s6, %s953_s14, %s953_s14, %s954_s21  }
  0x4d   : > { %p1244_p3 = scmp.ne.s32.totalorder %s1238_s27, 0 }
  0x4e   : > { %s1142_s12 = sand.u32 (!%p1244_p3), 1, %s934_s16   ;;  %p1245_p7 = scmp.ne.s32.totalorder (!%p1244_p3), %s1236_s25, 0 }
  0x4f   : > { %213 = sbr.rel (%p1244_p3) target bundleno = 359 (0x167), region = 36  ;;  %s602_s7 = sshll.u32 (!%p1244_p3), %s1142_s12, 5 }
  0x50   : > { %s216_s24 = scalar_lea.sflag (!%p1244_p3), [#allocation3], %s1142_s12  ;;  %s1148_s8 = scalar_lea.vmem (!%p1244_p3), [#allocation2], %s602_s7 }
  0x56   : > { %917 = dma.done.wait (%p1245_p7), %s216_s24, 512  }
  0x57   : > { %919 = vsyncadd (%p1245_p7), %s216_s24, 4294966784  ;;  %p1246_p13 = scmp.ne.s32.totalorder %s1234_s23, 0 }
  0x59   : > { %921 = dma.done.wait (%p1246_p13), [#allocation6], 1024  }
  0x5a   : > { %923 = vsyncadd (%p1246_p13), [#allocation6], 4294966272  ;;  %v794_v0 = vld [vmem:[#allocation5] sm:$0xff]   ;;  %v795_v1 = vld [vmem:[#allocation5 + $0x8] sm:$0xff]   ;;  %s247_s21 = scalar_lea.vmem [#allocation7], %s602_s7  ;;  %s641_s28 = sshll.u32 %s942_s18, 9 }
  0x5b   : > { %677 = vmatprep.subr.bf16.mxu0 %v794_v0  ;;  %701 = vmatprep.subr.bf16.mxu1 %v794_v0  ;;  %v796_v2 = vld [vmem:[#allocation5 + $0x10] sm:$0xff]   ;;  %v797_v3 = vld [vmem:[#allocation5 + $0x18] sm:$0xff]   ;;  %v802_v4 = vld [vmem:[%s1148_s8] sm:$0xff]   ;;  %s498_s22 = sshll.u32 %s247_s21, 4  ;;  %s1176_s18 = scalar_lea.hbm %s1229_s4, %s641_s28  ;;  %s1171_s22 = int_to_ptr.vmem [resolvable:$true] %s498_s22 }
  0x5c   : > { %678 = vmatpush3.bf16.msra.mxu0 %v794_v0  ;;  %709 = vmatpush3.bf16.msra.mxu1 %v794_v0  ;;  %v803_v5 = vld [vmem:[%s1148_s8 + $0x10] sm:$0xff]   ;;  %v798_v6 = vld [vmem:[#allocation5 + $0x20] sm:$0xff]   ;;  %v799_v7 = vld [vmem:[#allocation5 + $0x28] sm:$0xff]   ;;  %s483_s9 = scalar_lea.sflag [#allocation4], %s1142_s12  ;;  %s864_s11 = scalar_lea.vmem %s1171_s22, 512 }
  0x5d   : > { %679 = vmatprep.subr.bf16.mxu0 %v795_v1  ;;  %702 = vmatprep.subr.bf16.mxu1 %v795_v1  ;;  %v800_v8 = vld [vmem:[#allocation5 + $0x30] sm:$0xff]   ;;  %v801_v9 = vld [vmem:[#allocation5 + $0x38] sm:$0xff]   ;;  %v804_v10 = vld [vmem:[%s1148_s8 + $0x8] sm:$0xff]   ;;  %p865_p4 = scmp.ne.s32.totalorder %s1171_s22, %s864_s11  ;;  %s956_s13 = smov [#allocation7]  }
  0x5e   : > { %693 = vmatprep.mubr.bf16.mxu0 %v802_v4  ;;  %697 = vmatprep.mubr.bf16.mxu1 %v803_v5  ;;  %v805_v11 = vld [vmem:[%s1148_s8 + $0x18] sm:$0xff]   ;;  %v617_v12 = vld [vmem:[%s1227_s2] ss:$0 sm:$0xff]  ;;  %s868_s7 = sshll.u32 %s956_s13, 4  ;;  %s869_s7 = int_to_ptr.vmem [resolvable:$false] %s868_s7 }
  0x5f   : > { %v618_v19 = vld [vmem:[%s1228_s3] ss:$0 sm:$0xff]  ;;  %p866_p6 = pnand %p865_p4, %p1083_p10  ;;  %s870_s24 = scalar_lea.vmem %s869_s7, 1024 }
  0x60   : > { %680 = vmatpush3.bf16.msra.mxu0 %v795_v1  ;;  %710 = vmatpush3.bf16.msra.mxu1 %v795_v1  ;;  %p871_p12 = scmp.lt.s32.totalorder %s1171_s22, %s869_s7  ;;  %p872_p11 = scmp.lt.s32.totalorder %s870_s24, %s864_s11 }
  0x61   : > { %681 = vmatprep.subr.bf16.mxu0 %v796_v2  ;;  %703 = vmatprep.subr.bf16.mxu1 %v796_v2  ;;  %p867_p8 = pneg %p866_p6 }
  0x62   : > { %p873_p0 = por %p872_p11, %p871_p12 }
  0x64   : > { %682 = vmatpush3.bf16.msra.mxu0 %v796_v2  ;;  %711 = vmatpush3.bf16.msra.mxu1 %v796_v2  ;;  %p874_p5 = pnand %p873_p0, %p867_p8 }
  0x65   : > { %683 = vmatprep.subr.bf16.mxu0 %v797_v3  ;;  %704 = vmatprep.subr.bf16.mxu1 %v797_v3 }
  0x68   : > { %684 = vmatpush3.bf16.msra.mxu0 %v797_v3  ;;  %712 = vmatpush3.bf16.msra.mxu1 %v797_v3 }
  0x69   : > { %685 = vmatprep.subr.bf16.mxu0 %v798_v6  ;;  %705 = vmatprep.subr.bf16.mxu1 %v798_v6 }
  0x6c   : > { %686 = vmatpush3.bf16.msra.mxu0 %v798_v6  ;;  %713 = vmatpush3.bf16.msra.mxu1 %v798_v6 }
  0x6d   : > { %687 = vmatprep.subr.bf16.mxu0 %v799_v7  ;;  %706 = vmatprep.subr.bf16.mxu1 %v799_v7 }
  0x70   : > { %688 = vmatpush3.bf16.msra.mxu0 %v799_v7  ;;  %714 = vmatpush3.bf16.msra.mxu1 %v799_v7 }
  0x71   : > { %689 = vmatprep.subr.bf16.mxu0 %v800_v8  ;;  %707 = vmatprep.subr.bf16.mxu1 %v800_v8 }
  0x74   : > { %690 = vmatpush3.bf16.msra.mxu0 %v800_v8  ;;  %715 = vmatpush3.bf16.msra.mxu1 %v800_v8 }
  0x75   : > { %691 = vmatprep.subr.bf16.mxu0 %v801_v9  ;;  %708 = vmatprep.subr.bf16.mxu1 %v801_v9 }
  0x78   : > { %692 = vmatpush3.bf16.msra.mxu0 %v801_v9  ;;  %716 = vmatpush3.bf16.msra.mxu1 %v801_v9 }
  0x7b   : > { %694 = vmatmul.mubr.bf16.vlgmr.msra.gmra.mrb[0].mxu0 %v804_v10  ;;  %698 = vmatmul.mubr.bf16.vlgmr.msra.gmra.mrb[0].mxu1 %v805_v11 }
 0x14e   : > { %v695_v13 = vpop.f32.mrb[0].mxu0  ;;  %v699_v14 = vpop.f32.mrb[0].mxu1 }
 0x14f   : > { %v421_v15 = vmul.f32 %v695_v13, %v617_v12  ;;  %v425_v16 = vmul.f32 %v699_v14, %v617_v12  ;;  %v381_v17 = vpop.f32.mrb[1].mxu0  ;;  %v397_v18 = vpop.f32.mrb[1].mxu1 }
 0x150   : > { %v419_v20 = vmul.f32 %v617_v12, %v381_v17  ;;  %v423_v21 = vmul.f32 %v617_v12, %v397_v18  ;;  %v696_v22 = vpop.f32.mrb[2].mxu0  ;;  %v700_v23 = vpop.f32.mrb[2].mxu1 }
 0x151   : > { %v422_v24 = vmul.f32 %v696_v22, %v617_v12  ;;  %v426_v25 = vmul.f32 %v700_v23, %v617_v12  ;;  %v384_v26 = vpop.f32.mrb[3].mxu0  ;;  %v400_v27 = vpop.f32.mrb[3].mxu1  ;;  %v436_v30 = vadd.f32 %v618_v19, %v421_v15  ;;  %v440_v31 = vadd.f32 %v618_v19, %v425_v16 }
 0x152   : > { %v420_v28 = vmul.f32 %v617_v12, %v384_v26  ;;  %v424_v29 = vmul.f32 %v617_v12, %v400_v27  ;;  %v434_v34 = vadd.f32 %v618_v19, %v419_v20  ;;  %v438_v35 = vadd.f32 %v618_v19, %v423_v21 }
 0x153   : > { %v437_v32 = vadd.f32 %v618_v19, %v422_v24  ;;  %v441_v33 = vadd.f32 %v618_v19, %v426_v25 }
 0x154   : > { %v435_v36 = vadd.f32 %v618_v19, %v420_v28  ;;  %v439_v37 = vadd.f32 %v618_v19, %v424_v29 }
 0x155   : > { %v650_v38 = vpack.c.bf16 %v437_v32, %v436_v30  ;;  %v660_v39 = vpack.c.bf16 %v441_v33, %v440_v31 }
 0x156   : > { %v645_v40 = vpack.c.bf16 %v435_v36, %v434_v34  ;;  %v655_v41 = vpack.c.bf16 %v439_v37, %v438_v35 }
 0x157   : > { %662 = vst [vmem:[%s247_s21 + $0x8] sm:$0xff] %v650_v38   ;;  %664 = vst [vmem:[%s247_s21 + $0x18] sm:$0xff] %v660_v39  }
 0x158   : > { %646 = vst [vmem:[%s247_s21] sm:$0xff] %v645_v40   ;;  %663 = vst [vmem:[%s247_s21 + $0x10] sm:$0xff] %v655_v41  }
 0x159   : > { %877 = shalt.err (!%p874_p5)
}
 0x15a   : > { %s878_s8 = scalar_lea.hbm %s1176_s18, 512  ;;  %s882_s27 = scalar_lea.hbm %s1229_s4, 1024 }
 0x15b   : > { %p879_p9 = scmp.ne.s32.totalorder %s1176_s18, %s878_s8  ;;  %p883_p3 = scmp.lt.u32.totalorder %s1176_s18, %s1229_s4 }
 0x15c   : > { %p884_p7 = scmp.lt.u32.totalorder %s882_s27, %s878_s8  ;;  %p886_p4 = scmp.lt.u32.totalorder %s878_s8, %s1176_s18 }
 0x15d   : > { %p880_p1 = pnand %p879_p9, %p1083_p10 }
 0x15e   : > { %p885_p13 = por %p884_p7, %p883_p3 }
 0x15f   : > { %p881_p2 = pneg %p880_p1 }
 0x160   : > { %p887_p6 = por %p886_p4, %p885_p13 }
 0x162   : > { %p888_p8 = pnand %p887_p6, %p881_p2 }
 0x164   : > { %891 = shalt.err (!%p888_p8)
}
 0x165   : > { %s957_s28 = smov 64   ;;  %s958_s6 = smov 4  }
 0x166   : > { %723 = dma.vmem_to_hbm [thread:$0]  (%p1083_p10), %s1171_s22, 512, %s1176_s18, %s483_s9, %s957_s28, %s957_s28, %s958_s6  }
 0x167 PF: > { %s513_s29 = sand.u32 1, %s930_s15   ;;  %p1247_p12 = scmp.ne.s32.totalorder %s1237_s26, 0 }
 0x168   : > { %p1248_p11 = scmp.ge.s32.totalorder %s950_s20, 2  ;;  %s514_s11 = scalar_lea.sflag [#allocation4], %s513_s29 }
 0x16a   : > { %p734_p0 = pnand %p1248_p11, %p1247_p12 }
 0x16c   : > { %925 = dma.done.wait (!%p734_p0), %s514_s11, 512  }
 0x16d   : > { %927 = vsyncadd (!%p734_p0), %s514_s11, 4294966784  ;;  %s21_s20 = sadd.s32 1, %s950_s20   ;;  %s1249_s15 = smov %s934_s16 }
 0x16e   : > { %p18_p5 = scmp.ge.s32.totalorder %s21_s20, 4   ;;  %s1250_s16 = smov %s938_s17 }
 0x16f   : > { %s1251_s17 = smov %s1092_s10  ;;  %s1252_s18 = smov %s946_s19 }
 0x170   : > { %s1253_s19 = smov %s1255_s5  ;;  %20 = sbr.rel (!%p18_p5) target bundleno = 7 (0x7), region = 85 }
 0x177   :  { %519 = vsyncpa [#allocation3], 1 }
 0x178   :  { %521 = vsyncpa [#allocation3 + $0x1], 1 }
 0x179   :  { %522 = vsyncpa [#allocation6], 1 }
 0x17a   :  { %523 = vsyncpa [#allocation4], 1 }
 0x17b   :  { %525 = vsyncpa [#allocation4 + $0x1], 1 }

</bundles_post_ra>
